<compile_context>
chip_gen: v5e
topology: v5e:2x2
jax: 0.10.0
libtpu: 0.0.40
codegen_flags: <defaults>
</compile_context>

<pallas_src>
import jax
import jax.numpy as jnp
from jax.experimental import pallas as pl
from jax.experimental.pallas import tpu as pltpu


# ----------------------------- Pallas kernels --------------------------------

def _rope_fused_kernel(q_ref, k_ref, cos_ref, sin_ref, qo_ref, ko_ref):
    # q_ref/k_ref: (H, S_blk, D); cos_ref/sin_ref: (S_blk, D) shared across heads.
    # sin_ref already carries the rotate_half sign ([-sin_lo, +sin_hi]); because
    # the cache is built as concat([freqs, freqs], -1), rotate_half(x) * sin is
    # exactly roll(x, D//2, axis=-1) * sin_signed.
    c = cos_ref[...][None, :, :]
    s = sin_ref[...][None, :, :]
    d = q_ref.shape[-1]
    q = q_ref[...]
    k = k_ref[...]
    qo_ref[...] = q * c + pltpu.roll(q, d // 2, 2) * s
    ko_ref[...] = k * c + pltpu.roll(k, d // 2, 2) * s


def _rope_single_kernel(x_ref, cos_ref, sin_ref, o_ref):
    c = cos_ref[...][None, :, :]
    s = sin_ref[...][None, :, :]
    d = x_ref.shape[-1]
    x = x_ref[...]
    o_ref[...] = x * c + pltpu.roll(x, d // 2, 2) * s


# ------------------------------ Tiling helpers --------------------------------

def _cdiv(a, b):
    return -(-a // b)


def _physical_vmem_bytes():
    try:
        return int(pltpu.get_tpu_info().vmem_capacity_bytes)
    except Exception:
        # Conservative fallback: v7x has 64 MiB VMEM per TensorCore.
        return 64 << 20


def _sublane_multiple(itemsize):
    # f32 packs 8 rows per vreg sublane group, bf16/f16 pack 16, int8/fp8 pack 32.
    return {4: 8, 2: 16, 1: 32}.get(int(itemsize), 8)


def _pick_s_block(B, S, H, D, itemsize, n_big_streams, n_cs_streams,
                  min_grid_steps=8, min_rows=256):
    """Pick the largest S-block whose double-buffered working set fits the VMEM
    budget, then shrink (down to a floor) until the grid is deep enough to
    pipeline on both v7x TensorCores."""
    phys = _physical_vmem_bytes()
    budget = min(48 << 20, (phys * 3) // 8)
    # bytes of pipelined working set per S-row (factor 2 = double buffering).
    per_row = 2 * (n_big_streams * H + n_cs_streams) * D * itemsize
    sub = _sublane_multiple(itemsize)
    rows = max(sub, (budget // max(1, per_row)) // sub * sub)
    if rows >= S:
        rows = S
    floor = min(S, max(sub, min_rows))
    while rows > floor and B * _cdiv(S, rows) < min_grid_steps:
        rows = max(floor, (rows // 2) // sub * sub)
    return rows, phys


def _vmem_limit_bytes(phys, H, S_blk, D, itemsize, n_big_streams, n_cs_streams):
    working = 2 * (n_big_streams * H + n_cs_streams) * S_blk * D * itemsize
    # Working set + compiler headroom, never above ~7/8 of physical VMEM.
    return int(min(phys * 7 // 8, max(32 << 20, working + (16 << 20))))


def _specs_for(H, S_blk, D):
    x_spec = pl.BlockSpec((pl.Squeezed(), H, S_blk, D), lambda b, j: (b, 0, j, 0))
    cs_spec = pl.BlockSpec((pl.Squeezed(), S_blk, D), lambda b, j: (b, j, 0))
    return x_spec, cs_spec


# ------------------------------ Call wrappers ---------------------------------

def apply_rope_fused_pallas(q, k, cos_g, sin_g):
    """q, k: [B, H, S, D]; cos_g/sin_g: [B, S, D] (gathered, sin sign-folded)."""
    B, H, S, D = q.shape
    itemsize = jnp.dtype(q.dtype).itemsize
    n_big, n_cs = 4, 2  # q, k, qo, ko  +  cos, sin
    S_blk, phys = _pick_s_block(B, S, H, D, itemsize, n_big, n_cs)
    grid = (B, _cdiv(S, S_blk))
    x_spec, cs_spec = _specs_for(H, S_blk, D)

    n_elem = B * H * S * D
    cost = pl.CostEstimate(
        flops=6 * n_elem,  # 2 mul + 1 add per element, for q and k
        transcendentals=0,
        bytes_accessed=4 * n_elem * itemsize
        + 2 * B * S * D * jnp.dtype(cos_g.dtype).itemsize,
    )
    return pl.pallas_call(
        _rope_fused_kernel,
        out_shape=(jax.ShapeDtypeStruct(q.shape, q.dtype),
                   jax.ShapeDtypeStruct(k.shape, k.dtype)),
        grid_spec=pltpu.PrefetchScalarGridSpec(
            num_scalar_prefetch=0,
            grid=grid,
            in_specs=[x_spec, x_spec, cs_spec, cs_spec],
            out_specs=(x_spec, x_spec),
        ),
        compiler_params=pltpu.CompilerParams(
            dimension_semantics=("parallel", "parallel"),
            vmem_limit_bytes=_vmem_limit_bytes(
                phys, H, S_blk, D, itemsize, n_big, n_cs)),
        cost_estimate=cost,
    )(q, k, cos_g, sin_g)


def apply_rope_pallas(x, cos_g, sin_g):
    """Single-tensor fallback (used when q_len != k_len). x: [B, H, S, D]."""
    # TODO(synk): fuse the q_len != k_len case into one call gridded over k's
    # S-blocks with an offset index_map + pl.when for q, to avoid a second HBM
    # pass over the overlapping cos/sin rows.
    B, H, S, D = x.shape
    itemsize = jnp.dtype(x.dtype).itemsize
    n_big, n_cs = 2, 2  # x, o  +  cos, sin
    S_blk, phys = _pick_s_block(B, S, H, D, itemsize, n_big, n_cs)
    grid = (B, _cdiv(S, S_blk))
    x_spec, cs_spec = _specs_for(H, S_blk, D)

    n_elem = B * H * S * D
    cost = pl.CostEstimate(
        flops=3 * n_elem,
        transcendentals=0,
        bytes_accessed=2 * n_elem * itemsize
        + 2 * B * S * D * jnp.dtype(cos_g.dtype).itemsize,
    )
    return pl.pallas_call(
        _rope_single_kernel,
        out_shape=jax.ShapeDtypeStruct(x.shape, x.dtype),
        grid_spec=pltpu.PrefetchScalarGridSpec(
            num_scalar_prefetch=0,
            grid=grid,
            in_specs=[x_spec, cs_spec, cs_spec],
            out_specs=x_spec,
        ),
        compiler_params=pltpu.CompilerParams(
            dimension_semantics=("parallel", "parallel"),
            vmem_limit_bytes=_vmem_limit_bytes(
                phys, H, S_blk, D, itemsize, n_big, n_cs)),
        cost_estimate=cost,
    )(x, cos_g, sin_g)


# --------------------------- Module equivalent --------------------------------

class RectifiedRotaryEmbedding:
    """JAX/Pallas port of the PyTorch RectifiedRotaryEmbedding module."""

    def __init__(self, dim, max_position_embeddings: int = 2048,
                 base: int = 10000):
        self.dim = dim
        self.max_position_embeddings = max_position_embeddings
        self.base = base
        inv_freq = 1.0 / (base ** (jnp.arange(0, dim, 2, dtype=jnp.float32) / dim))
        self.inv_freq = inv_freq
        self._set_cos_sin_cache(max_position_embeddings)

    def _set_cos_sin_cache(self, seq_len):
        self.max_seq_len_cached = seq_len
        t = jnp.arange(seq_len, dtype=self.inv_freq.dtype)
        freqs = jnp.einsum("i,j->ij", t, self.inv_freq)       # [seq, dim/2]
        # NOTE: the kernel's roll-based rotate_half depends on this exact
        # concat([freqs, freqs]) layout (lo half == hi half for cos and sin).
        emb = jnp.concatenate([freqs, freqs], axis=-1)        # [seq, dim]
        self.cos_cached = jnp.cos(emb)                        # [seq, dim] f32
        self.sin_cached = jnp.sin(emb)                        # [seq, dim] f32

    def __call__(self, q, k, seq_len=None, position_ids=None):
        # TODO(synk): this Python-level cache regrow works eagerly but not
        # under jax.jit with a traced seq_len (same limitation as the original).
        if seq_len > self.max_seq_len_cached:
            self._set_cos_sin_cache(seq_len)

        # Match the PyTorch module: cos/sin are cast to q.dtype before use.
        cos = self.cos_cached[:seq_len].astype(q.dtype)       # [seq_len, D]
        sin = self.sin_cached[:seq_len].astype(q.dtype)

        # Fold the rotate_half sign into the sin table once ([-sin_lo, +sin_hi])
        # so the kernel uses a plain pltpu.roll instead of slice/negate/concat.
        half = self.dim // 2
        sin_signed = jnp.concatenate([-sin[:, :half], sin[:, half:]], axis=-1)

        q_len = q.shape[2]
        k_len = k.shape[2]

        # Only gather the rows that are actually consumed (k covers all of
        # them; q uses the trailing q_len rows -> "rectified" RoPE).
        pids = position_ids[:, -k_len:]
        cos_g = jnp.take(cos, pids, axis=0)                   # [B, k_len, D]
        sin_g = jnp.take(sin_signed, pids, axis=0)

        cos_q = cos_g[:, k_len - q_len:, :]
        sin_q = sin_g[:, k_len - q_len:, :]

        if q_len == k_len:
            # Fused path: cos/sin read from HBM once for both q and k.
            return apply_rope_fused_pallas(q, k, cos_q, sin_q)

        # TODO(synk): for D < 128, pack two heads per lane row to keep stores
        # lane-dense; current layout is correct but uses masked partial stores.
        q_embed = apply_rope_pallas(q, cos_q, sin_q)
        k_embed = apply_rope_pallas(k, cos_g, sin_g)
        return q_embed, k_embed


# ------------------------------ Reference -------------------------------------

def _rotate_half_ref(x):
    x1 = x[..., : x.shape[-1] // 2]
    x2 = x[..., x.shape[-1] // 2:]
    return jnp.concatenate([-x2, x1], axis=-1)


def _ref_forward(rope, q, k, seq_len, position_ids):
    cos = rope.cos_cached[:seq_len].astype(q.dtype)
    sin = rope.sin_cached[:seq_len].astype(q.dtype)
    cos_g = jnp.take(cos, position_ids, axis=0)[:, None, :, :]   # [B,1,S,D]
    sin_g = jnp.take(sin, position_ids, axis=0)[:, None, :, :]
    q_len, k_len = q.shape[2], k.shape[2]
    q_embed = q * cos_g[:, :, -q_len:] + _rotate_half_ref(q) * sin_g[:, :, -q_len:]
    k_embed = k * cos_g[:, :, -k_len:] + _rotate_half_ref(k) * sin_g[:, :, -k_len:]
    return q_embed, k_embed


# -------------------------------- Main -----------------------------------------

if __name__ == "__main__":
    B, H, S, D = 2, 4, 16, 128
    max_pos = 64

    key = jax.random.PRNGKey(0)
    kq, kk = jax.random.split(key, 2)
    q = jax.random.normal(kq, (B, H, S, D), dtype=jnp.float32)
    k = jax.random.normal(kk, (B, H, S, D), dtype=jnp.float32)
    # Distinct positions per batch row to exercise the gather.
    position_ids = (jnp.arange(S, dtype=jnp.int32)[None, :]
                    + jnp.array([[0], [max_pos - S]], dtype=jnp.int32))

    rope = RectifiedRotaryEmbedding(dim=D, max_position_embeddings=max_pos)

    # Fused q/k path (q_len == k_len).
    q_embed, k_embed = rope(q, k, seq_len=max_pos, position_ids=position_ids)
    q_embed = jax.block_until_ready(q_embed)
    k_embed = jax.block_until_ready(k_embed)
    q_ref, k_ref = _ref_forward(rope, q, k, max_pos, position_ids)
    assert jnp.allclose(q_embed, q_ref, atol=1e-5, rtol=1e-5)
    assert jnp.allclose(k_embed, k_ref, atol=1e-5, rtol=1e-5)

    # Rectified path (q shorter than k): falls back to two single-tensor calls.
    q_short = q[:, :, S // 2:, :]
    q_embed2, k_embed2 = rope(q_short, k, seq_len=max_pos,
                              position_ids=position_ids)
    q_embed2 = jax.block_until_ready(q_embed2)
    k_embed2 = jax.block_until_ready(k_embed2)
    q_ref2, k_ref2 = _ref_forward(rope, q_short, k, max_pos, position_ids)
    assert jnp.allclose(q_embed2, q_ref2, atol=1e-5, rtol=1e-5)
    assert jnp.allclose(k_embed2, k_ref2, atol=1e-5, rtol=1e-5)

    # bf16 path exercises the dtype-aware (16-row) sublane alignment.
    qb, kb = q.astype(jnp.bfloat16), k.astype(jnp.bfloat16)
    qb_e, kb_e = rope(qb, kb, seq_len=max_pos, position_ids=position_ids)
    qb_e = jax.block_until_ready(qb_e)
    kb_e = jax.block_until_ready(kb_e)
    qb_r, kb_r = _ref_forward(rope, qb, kb, max_pos, position_ids)
    assert jnp.allclose(qb_e.astype(jnp.float32), qb_r.astype(jnp.float32),
                        atol=2e-2, rtol=2e-2)
    assert jnp.allclose(kb_e.astype(jnp.float32), kb_r.astype(jnp.float32),
                        atol=2e-2, rtol=2e-2)

    print("KERNEL_OK")
</pallas_src>

<mosaic_0001>
module attributes {stable_mosaic.version = 11 : i64} {
  func.func @_rope_fused_kernel(%arg0: i32, %arg1: i32, %arg2: memref<1x4x16x128xf32, #tpu.memory_space<vmem>>, %arg3: memref<1x4x16x128xf32, #tpu.memory_space<vmem>>, %arg4: memref<1x16x128xf32, #tpu.memory_space<vmem>>, %arg5: memref<1x16x128xf32, #tpu.memory_space<vmem>>, %arg6: memref<1x4x16x128xf32, #tpu.memory_space<vmem>>, %arg7: memref<1x4x16x128xf32, #tpu.memory_space<vmem>>) attributes {dimension_semantics = [#tpu.dimension_semantics<parallel>, #tpu.dimension_semantics<parallel>], iteration_bounds = array<i64: 2, 1>, scalar_prefetch = 0 : i64, scratch_operands = 0 : i64, tpu.core_type = #tpu.core_type<tc>, window_params = [{transform_indices = @transform_0, window_bounds = array<i64: 1, 4, 16, 128>}, {transform_indices = @transform_1, window_bounds = array<i64: 1, 4, 16, 128>}, {transform_indices = @transform_2, window_bounds = array<i64: 1, 16, 128>}, {transform_indices = @transform_3, window_bounds = array<i64: 1, 16, 128>}, {transform_indices = @transform_4, window_bounds = array<i64: 1, 4, 16, 128>}, {transform_indices = @transform_5, window_bounds = array<i64: 1, 4, 16, 128>}]} {
    %c0 = arith.constant 0 : index
    %c0_0 = arith.constant 0 : index
    %c0_1 = arith.constant 0 : index
    %0 = vector.load %arg4[%c0, %c0_0, %c0_1] : memref<1x16x128xf32, #tpu.memory_space<vmem>>, vector<1x16x128xf32>
    %1 = vector.shape_cast %0 : vector<1x16x128xf32> to vector<16x128xf32>
    %2 = vector.shape_cast %1 : vector<16x128xf32> to vector<1x16x128xf32>
    %c0_2 = arith.constant 0 : index
    %c0_3 = arith.constant 0 : index
    %c0_4 = arith.constant 0 : index
    %3 = vector.load %arg5[%c0_2, %c0_3, %c0_4] : memref<1x16x128xf32, #tpu.memory_space<vmem>>, vector<1x16x128xf32>
    %4 = vector.shape_cast %3 : vector<1x16x128xf32> to vector<16x128xf32>
    %5 = vector.shape_cast %4 : vector<16x128xf32> to vector<1x16x128xf32>
    %c0_5 = arith.constant 0 : index
    %c0_6 = arith.constant 0 : index
    %c0_7 = arith.constant 0 : index
    %c0_8 = arith.constant 0 : index
    %6 = vector.load %arg2[%c0_5, %c0_6, %c0_7, %c0_8] : memref<1x4x16x128xf32, #tpu.memory_space<vmem>>, vector<1x4x16x128xf32>
    %7 = vector.shape_cast %6 : vector<1x4x16x128xf32> to vector<4x16x128xf32>
    %c0_9 = arith.constant 0 : index
    %c0_10 = arith.constant 0 : index
    %c0_11 = arith.constant 0 : index
    %c0_12 = arith.constant 0 : index
    %8 = vector.load %arg3[%c0_9, %c0_10, %c0_11, %c0_12] : memref<1x4x16x128xf32, #tpu.memory_space<vmem>>, vector<1x4x16x128xf32>
    %9 = vector.shape_cast %8 : vector<1x4x16x128xf32> to vector<4x16x128xf32>
    %10 = vector.broadcast %2 : vector<1x16x128xf32> to vector<4x16x128xf32>
    %11 = arith.mulf %7, %10 : vector<4x16x128xf32>
    %c64_i32 = arith.constant 64 : i32
    %12 = tpu.dynamic_rotate %7 by %c64_i32 dim 2 : vector<4x16x128xf32>, i32 -> vector<4x16x128xf32>
    %13 = vector.broadcast %5 : vector<1x16x128xf32> to vector<4x16x128xf32>
    %14 = arith.mulf %12, %13 : vector<4x16x128xf32>
    %15 = arith.addf %11, %14 : vector<4x16x128xf32>
    %c0_13 = arith.constant 0 : index
    %c0_14 = arith.constant 0 : index
    %c0_15 = arith.constant 0 : index
    %c0_16 = arith.constant 0 : index
    %16 = vector.load %arg6[%c0_13, %c0_14, %c0_15, %c0_16] : memref<1x4x16x128xf32, #tpu.memory_space<vmem>>, vector<1x4x16x128xf32>
    %17 = vector.shape_cast %16 : vector<1x4x16x128xf32> to vector<4x16x128xf32>
    %18 = vector.shape_cast %15 : vector<4x16x128xf32> to vector<1x4x16x128xf32>
    tpu.vector_store %arg6[%c0_13, %c0_14, %c0_15, %c0_16], %18 {strides = array<i32>} : memref<1x4x16x128xf32, #tpu.memory_space<vmem>>, vector<1x4x16x128xf32>,
    %19 = vector.broadcast %2 : vector<1x16x128xf32> to vector<4x16x128xf32>
    %20 = arith.mulf %9, %19 : vector<4x16x128xf32>
    %c64_i32_17 = arith.constant 64 : i32
    %21 = tpu.dynamic_rotate %9 by %c64_i32_17 dim 2 : vector<4x16x128xf32>, i32 -> vector<4x16x128xf32>
    %22 = vector.broadcast %5 : vector<1x16x128xf32> to vector<4x16x128xf32>
    %23 = arith.mulf %21, %22 : vector<4x16x128xf32>
    %24 = arith.addf %20, %23 : vector<4x16x128xf32>
    %c0_18 = arith.constant 0 : index
    %c0_19 = arith.constant 0 : index
    %c0_20 = arith.constant 0 : index
    %c0_21 = arith.constant 0 : index
    %25 = vector.load %arg7[%c0_18, %c0_19, %c0_20, %c0_21] : memref<1x4x16x128xf32, #tpu.memory_space<vmem>>, vector<1x4x16x128xf32>
    %26 = vector.shape_cast %25 : vector<1x4x16x128xf32> to vector<4x16x128xf32>
    %27 = vector.shape_cast %24 : vector<4x16x128xf32> to vector<1x4x16x128xf32>
    tpu.vector_store %arg7[%c0_18, %c0_19, %c0_20, %c0_21], %27 {strides = array<i32>} : memref<1x4x16x128xf32, #tpu.memory_space<vmem>>, vector<1x4x16x128xf32>,
    return
  }
  func.func @transform_0(%arg0: i32, %arg1: i32) -> (i32, i32, i32, i32) {
    %c0_i32 = arith.constant 0 : i32
    %c0_i32_0 = arith.constant 0 : i32
    %c0_i32_1 = arith.constant 0 : i32
    return %arg0, %c0_i32, %arg1, %c0_i32_0 : i32, i32, i32, i32
  }
  func.func @transform_1(%arg0: i32, %arg1: i32) -> (i32, i32, i32, i32) {
    %c0_i32 = arith.constant 0 : i32
    %c0_i32_0 = arith.constant 0 : i32
    %c0_i32_1 = arith.constant 0 : i32
    return %arg0, %c0_i32, %arg1, %c0_i32_0 : i32, i32, i32, i32
  }
  func.func @transform_2(%arg0: i32, %arg1: i32) -> (i32, i32, i32) {
    %c0_i32 = arith.constant 0 : i32
    %c0_i32_0 = arith.constant 0 : i32
    return %arg0, %arg1, %c0_i32 : i32, i32, i32
  }
  func.func @transform_3(%arg0: i32, %arg1: i32) -> (i32, i32, i32) {
    %c0_i32 = arith.constant 0 : i32
    %c0_i32_0 = arith.constant 0 : i32
    return %arg0, %arg1, %c0_i32 : i32, i32, i32
  }
  func.func @transform_4(%arg0: i32, %arg1: i32) -> (i32, i32, i32, i32) {
    %c0_i32 = arith.constant 0 : i32
    %c0_i32_0 = arith.constant 0 : i32
    %c0_i32_1 = arith.constant 0 : i32
    return %arg0, %c0_i32, %arg1, %c0_i32_0 : i32, i32, i32, i32
  }
  func.func @transform_5(%arg0: i32, %arg1: i32) -> (i32, i32, i32, i32) {
    %c0_i32 = arith.constant 0 : i32
    %c0_i32_0 = arith.constant 0 : i32
    %c0_i32_1 = arith.constant 0 : i32
    return %arg0, %c0_i32, %arg1, %c0_i32_0 : i32, i32, i32, i32
  }
}

</mosaic_0001>

<bundles_post_ra>
// kernel: tpu_custom_call.1
= control target key start
LH: loop header
LB: loop body
LE: loop exit
PB: predicated region body
PF: predicated region fallthrough
CT: control target
= control target key end

     0   :  { %s1512_s0 = inlined_call_operand.hbm [shape: f32[2,4,16,128], index: 0, kind: input, shape index: {}]   ;;  %s1513_s1 = inlined_call_operand.hbm [shape: f32[2,4,16,128], index: 1, kind: input, shape index: {}]   ;;  %s1514_s2 = inlined_call_operand.hbm [shape: f32[2,16,128], index: 2, kind: input, shape index: {}]   ;;  %s1515_s3 = inlined_call_operand.hbm [shape: f32[2,16,128], index: 3, kind: input, shape index: {}]   ;;  %s1516_s4 = inlined_call_operand.hbm [shape: f32[2,4,16,128], index: 4, kind: output, shape index: {0}]   ;;  %s1517_s5 = inlined_call_operand.hbm [shape: f32[2,4,16,128], index: 5, kind: output, shape index: {1}]  }
   0x1   :  { %1523 = sst [smem:[#allocation23_spill]] %s1512_s0 }
   0x2   :  { %1524 = sst [smem:[#allocation24_spill]] %s1513_s1 }
   0x3   :  { %11 = vsyncpa [#allocation3], 0 }
   0x4   :  { %13 = vsyncpa [#allocation3 + $0x1], 0 }
   0x5   :  { %14 = vsyncpa [#allocation6], 0 }
   0x6   :  { %16 = vsyncpa [#allocation6 + $0x1], 0 }
   0x7   :  { %17 = vsyncpa [#allocation9], 0 }
   0x8   :  { %19 = vsyncpa [#allocation9 + $0x1], 0 }
   0x9   :  { %20 = vsyncpa [#allocation4], 0 }
   0xa   :  { %22 = vsyncpa [#allocation4 + $0x1], 0 }
   0xb   :  { %23 = vsyncpa [#allocation12], 0 }
   0xc   :  { %25 = vsyncpa [#allocation12 + $0x1], 0  ;;  %s1176_s18 = smov 0   ;;  %s1178_s19 = smov 0  }
   0xd   :  { %s1180_s20 = smov 0   ;;  %s1182_s21 = smov 0  }
   0xe   :  { %s1184_s22 = smov 0   ;;  %s1186_s23 = smov 0  }
   0xf LB: > { %1525 = sst [smem:[#allocation18_spill]] %s1127_s20  ;;  %s1207_s24 = sadd.s32 4294967295, %s1139_s23   ;;  %s1139_s23 = sphi %s1186_s23, %s31_s23   ;;  %s1135_s22 = sphi %s1184_s22, %s1546_s22   ;;  %s1131_s21 = sphi %s1182_s21, %s1545_s21   ;;  %s1127_s20 = sphi %s1180_s20, %s1541_s20   ;;  %s1123_s19 = sphi %s1178_s19, %s1544_s19   ;;  %s1119_s18 = sphi %s1176_s18, %s1543_s18  }
  0x10   : > { %1526 = sst [smem:[#allocation19_spill]] %s1139_s23  ;;  %s774_s25 = sadd.s32 4294967294, %s1139_s23  }
  0x11   : > { %s43_s26 = sadd.s32 1, %s1135_s22  ;;  %s52_s27 = sadd.s32 1, %s1127_s20 }
  0x12   : > { %p45_p0 = scmp.ge.s32.totalorder %s43_s26, 2  ;;  %p59_p1 = scmp.ne.s32.totalorder %s1127_s20, %s1123_s19 }
  0x13   : > { %p60_p2 = scmp.eq.s32.totalorder %s1139_s23, 0  ;;  %p65_p3 = scmp.ne.s32.totalorder %s1123_s19, %s1119_s18 }
  0x14   : > { %s1548_s26 = smov (%p45_p0, %s43_s26), 0  ;;  %p66_p5 = scmp.eq.s32.totalorder %s1207_s24, 0 }
  0x15   : > { %1527 = sst [smem:[#allocation20_spill]] %s1548_s26  ;;  %p1219_p4 = por %p60_p2, %p59_p1 }
  0x16   : > { %s47_s29 = ssub.s32 %s1135_s22, %s1548_s26  ;;  %p175_p6 = scmp.eq.s32.totalorder %s1207_s24, 1 }
  0x17   : > { %p50_p7 = scmp.eq.s32.totalorder %s47_s29, 0  ;;  %p1227_p8 = por %p66_p5, %p65_p3 }
  0x18   : > { %p1231_p9 = por %p175_p6, %p59_p1  ;;  %p181_p10 = scmp.eq.s32.totalorder %s774_s25, 1 }
  0x19   : > { %s1236_s7 = scalar_select %p50_p7, %s1127_s20, %s52_s27  }
  0x1a   : > { %p1238_p11 = por %p181_p10, %p65_p3  ;;  %p776_p12 = scmp.ge.s32.totalorder %s1139_s23, 2 }
  0x1b   : > { %1531 = sst [smem:[#allocation21_spill]] %s1236_s7  ;;  %p842_p13 = scmp.lt.s32.totalorder %s1139_s23, 2 }
  0x1c   : > { %s1532_s8 = scalar_select %p1238_p11, 1, 0 }
  0x1d   : > { %s1245_s9 = sand.u32 1, %s1127_s20   ;;  %s804_s11 = sshll.u32 %s1135_s22, 6 }
  0x1e   : > { %1533 = sst [smem:[#allocation22_spill]] %s1532_s8  ;;  %s777_s10 = sshll.u32 %s1245_s9, 6 }
  0x1f   : > { %p1251_p0 = pnand %p842_p13, %p1219_p4  ;;  %s253_s13 = sand.u32 1, %s1139_s23  }
  0x20   : > { %s1535_s1 = sld [smem:[#allocation24_spill]]  ;;  %s257_s25 = scalar_lea.vmem [#allocation5], %s777_s10 }
  0x21   : > { %s267_s27 = sshll.u32 %s257_s25, 4  ;;  %s254_s29 = scalar_lea.sflag [#allocation6], %s253_s13  ;;  %s268_s27 = int_to_ptr.vmem [resolvable:$true] %s267_s27 }
  0x22   : > { %s1141_s28 = smov 128   ;;  %s1142_s26 = smov 8  }
  0x23   : > { %p789_p1 = scmp.ge.s32.totalorder %s1139_s23, 1  ;;  %p323_p2 = scmp.lt.s32.totalorder %s1139_s23, 3 }
  0x24   : > { %s1537_s0 = sld [smem:[#allocation23_spill]]  ;;  %s230_s20 = scalar_lea.sflag [#allocation3], %s1245_s9 }
  0x25   : > { %p1266_p3 = pnand %p789_p1, %p323_p2  ;;  %s302_s23 = scalar_lea.sflag [#allocation9], %s1245_s9 }
  0x26   : > { %s264_s16 = scalar_lea.hbm %s1535_s1, %s804_s11  ;;  %s233_s1 = scalar_lea.vmem [#allocation2], %s777_s10 }
  0x27   : > { %s265_s17 = sshll.u32 %s264_s16, 4  ;;  %s243_s7 = sshll.u32 %s233_s1, 4  ;;  %s266_s17 = int_to_ptr.hbm [resolvable:$true] %s265_s17  ;;  %s244_s7 = int_to_ptr.vmem [resolvable:$true] %s243_s7 }
  0x28   : > { %828 = dma.hbm_to_vmem [thread:$0]  (!%p1251_p0), %s266_s17, 1024, %s268_s27, %s254_s29, %s1141_s28, %s1141_s28, %s1142_s26  }
  0x29   : > { %s783_s17 = sshll.u32 %s1245_s9, 4  ;;  %s806_s27 = sshll.u32 %s1135_s22, 4 }
  0x2a   : > { %s240_s25 = scalar_lea.hbm %s1537_s0, %s804_s11  ;;  %s288_s11 = scalar_lea.hbm %s1514_s2, %s806_s27 }
  0x2b   : > { %s241_s13 = sshll.u32 %s240_s25, 4  ;;  %s289_s15 = sshll.u32 %s288_s11, 4  ;;  %s242_s13 = int_to_ptr.hbm [resolvable:$true] %s241_s13  ;;  %s290_s15 = int_to_ptr.hbm [resolvable:$true] %s289_s15 }
  0x2c   : > { %825 = dma.hbm_to_vmem [thread:$0]  (!%p1251_p0), %s242_s13, 1024, %s244_s7, %s230_s20, %s1141_s28, %s1141_s28, %s1142_s26  }
  0x2d   : > { %s281_s16 = scalar_lea.vmem [#allocation7], %s783_s17  ;;  %s312_s7 = scalar_lea.hbm %s1515_s3, %s806_s27 }
  0x2e   : > { %s291_s10 = sshll.u32 %s281_s16, 4  ;;  %s305_s25 = scalar_lea.vmem [#allocation8], %s783_s17  ;;  %s292_s10 = int_to_ptr.vmem [resolvable:$true] %s291_s10 }
  0x2f   : > { %831 = dma.hbm_to_vmem [thread:$0]  (!%p1251_p0), %s290_s15, 256, %s292_s10, %s254_s29, %s1141_s28, %s1141_s28, %s1142_s26  }
  0x30   : > { %s315_s13 = sshll.u32 %s305_s25, 4  ;;  %s313_s0 = sshll.u32 %s312_s7, 4  ;;  %s316_s13 = int_to_ptr.vmem [resolvable:$true] %s315_s13  ;;  %s314_s0 = int_to_ptr.hbm [resolvable:$true] %s313_s0 }
  0x31   : > { %834 = dma.hbm_to_vmem [thread:$0]  (!%p1251_p0), %s314_s0, 256, %s316_s13, %s302_s23, %s1141_s28, %s1141_s28, %s1142_s26  }
  0x32   : > { %327 = sbr.rel (%p1266_p3) target bundleno = 225 (0xe1), region = 36  ;;  %s1301_s8 = sand.u32 (!%p1266_p3), 1, %s1123_s19  }
  0x33   : > { %s1304_s29 = sshll.u32 (!%p1266_p3), %s1301_s8, 6  ;;  %s330_s17 = scalar_lea.sflag (!%p1266_p3), [#allocation3], %s1301_s8 }
  0x34   : > { %s333_s27 = scalar_lea.vmem (!%p1266_p3), [#allocation2], %s1304_s29 }
  0x37   : > { %1098 = dma.done.wait (%p1227_p8), %s330_s17, 1024  }
  0x38   : > { %1100 = vsyncadd (%p1227_p8), %s330_s17, 4294966272  ;;  %s339_s0 = sand.u32 1, %s1207_s24   ;;  %s1314_s9 = scalar_lea.vmem [#allocation5], %s1304_s29 }
  0x39   : > { %s340_s26 = scalar_lea.sflag [#allocation6], %s339_s0 }
  0x3a   : > { %1102 = dma.done.wait (%p1227_p8), %s340_s26, 1280  }
  0x3b   : > { %1104 = vsyncadd (%p1227_p8), %s340_s26, 4294966016  ;;  %s792_s12 = sshll.u32 %s1301_s8, 4  ;;  %s360_s14 = scalar_lea.sflag [#allocation9], %s1301_s8 }
  0x3c   : > { %s1321_s28 = scalar_lea.vmem [#allocation7], %s792_s12  ;;  %s1324_s11 = scalar_lea.vmem [#allocation8], %s792_s12 }
  0x3d   : > { %1106 = dma.done.wait (%p1227_p8), %s360_s14, 256  }
  0x3e   : > { %1108 = vsyncadd (%p1227_p8), %s360_s14, 4294967040  ;;  %v421_v0 = vld [vmem:[%s333_s27] sm:$0xff]  ;;  %v423_v1 = vld [vmem:[%s333_s27 + $0x10] sm:$0xff]  ;;  %s1143_s24 = smov 64   ;;  %s1384_s30 = scalar_lea.vmem [#allocation10], %s1304_s29 }
  0x3f   : > { %445 = vrot.lane.b32.xlu0 %v421_v0, %s1143_s24  ;;  %449 = vrot.lane.b32.xlu1 %v423_v1, %s1143_s24  ;;  %v425_v2 = vld [vmem:[%s333_s27 + $0x20] sm:$0xff]  ;;  %v422_v3 = vld [vmem:[%s333_s27 + $0x8] sm:$0xff]  ;;  %s1401_s15 = scalar_lea.vmem [#allocation11], %s1304_s29  ;;  %s808_s16 = sshll.u32 %s1131_s21, 6 }
  0x40   : > { %453 = vrot.lane.b32.xlu2 %v425_v2, %s1143_s24  ;;  %v424_v4 = vld [vmem:[%s333_s27 + $0x18] sm:$0xff]  ;;  %v426_v5 = vld [vmem:[%s333_s27 + $0x28] sm:$0xff]  ;;  %v1336_v6 = vld [vmem:[%s333_s27 + $0x30] sm:$0xff]  ;;  %s552_s20 = scalar_lea.hbm %s1516_s4, %s808_s16  ;;  %s553_s7 = sshll.u32 %s1384_s30, 4  ;;  %s554_s7 = int_to_ptr.vmem [resolvable:$true] %s553_s7 }
  0x41   : > { %v1338_v7 = vld [vmem:[%s333_s27 + $0x38] sm:$0xff]  ;;  %v429_v8 = vld [vmem:[%s1314_s9] sm:$0xff]  ;;  %v1347_v9 = vld [vmem:[%s1314_s9 + $0x8] sm:$0xff]  ;;  %s555_s25 = sshll.u32 %s552_s20, 4  ;;  %s534_s13 = scalar_lea.sflag [#allocation4], %s1301_s8  ;;  %s556_s25 = int_to_ptr.hbm [resolvable:$true] %s555_s25 }
  0x42   : > { %v1350_v10 = vld [vmem:[%s1314_s9 + $0x10] sm:$0xff]  ;;  %v432_v11 = vld [vmem:[%s1314_s9 + $0x18] sm:$0xff]  ;;  %v1359_v12 = vld [vmem:[%s1314_s9 + $0x20] sm:$0xff]  ;;  %s1031_s23 = sshra.s32 %s556_s25, 4  ;;  %s1037_s0 = scalar_lea.hbm %s1516_s4, 128  ;;  %s1032_s23 = int_to_ptr.hbm [resolvable:$true] %s1031_s23 }
  0x43   : > { %v1362_v13 = vld [vmem:[%s1314_s9 + $0x28] sm:$0xff]  ;;  %v435_v14 = vld [vmem:[%s1314_s9 + $0x30] sm:$0xff]  ;;  %v1371_v15 = vld [vmem:[%s1314_s9 + $0x38] sm:$0xff]  ;;  %s1033_s29 = scalar_lea.hbm %s1032_s23, 64  ;;  %p1038_p7 = scmp.lt.s32.totalorder %s1032_s23, %s1516_s4 }
  0x44   : > { %v1376_v16 = vld [vmem:[%s1321_s28] sm:$0xff]  ;;  %v1388_v22 = vld [vmem:[%s1321_s28 + $0x8] sm:$0xff]  ;;  %p1034_p4 = scmp.ne.s32.totalorder %s1032_s23, %s1033_s29  ;;  %p1039_p8 = scmp.lt.s32.totalorder %s1037_s0, %s1033_s29 }
  0x45   : > { %v441_v17 = vmul.f32 %v425_v2, %v1376_v16  ;;  %v1380_v18 = vld [vmem:[%s1324_s11] sm:$0xff]  ;;  %v442_v23 = vmul.f32 %v426_v5, %v1388_v22  ;;  %v1392_v24 = vld [vmem:[%s1324_s11 + $0x8] sm:$0xff]  ;;  %v485_v28 = vmul.f32 %v429_v8, %v1376_v16  ;;  %v437_v32 = vmul.f32 %v421_v0, %v1376_v16 }
  0x46   : > { %v439_v33 = vmul.f32 %v423_v1, %v1376_v16  ;;  %v488_v38 = vmul.f32 %v432_v11, %v1388_v22  ;;  %v438_v44 = vmul.f32 %v422_v3, %v1388_v22  ;;  %v440_v45 = vmul.f32 %v424_v4, %v1388_v22  ;;  %p1035_p5 = pnand %p1034_p4, %p1231_p9  ;;  %p1040_p10 = por %p1039_p8, %p1038_p7 }
  0x47   : > { %447 = vrot.lane.b32.xlu0 %v422_v3, %s1143_s24  ;;  %451 = vrot.lane.b32.xlu1 %v424_v4, %s1143_s24  ;;  %v491_v50 = vmul.f32 %v435_v14, %v1376_v16  ;;  %v443_v56 = vmul.f32 %v1336_v6, %v1376_v16  ;;  %v444_v57 = vmul.f32 %v1338_v7, %v1388_v22 }
  0x48   : > { %455 = vrot.lane.b32.xlu2 %v426_v5, %s1143_s24  ;;  %v486_v0 = vmul.f32 %v1347_v9, %v1388_v22  ;;  %v487_v1 = vmul.f32 %v1350_v10, %v1376_v16  ;;  %p1036_p6 = pneg %p1035_p5 }
  0x4a   : > { %p1041_p13 = pnand %p1040_p10, %p1036_p6 }
  0x4f   : > { %457 = vrot.lane.b32.xlu0 %v1336_v6, %s1143_s24  ;;  %459 = vrot.lane.b32.xlu1 %v1338_v7, %s1143_s24 }
  0x50   : > { %493 = vrot.lane.b32.xlu2 %v429_v8, %s1143_s24 }
  0x57   : > { %495 = vrot.lane.b32.xlu0 %v1347_v9, %s1143_s24  ;;  %497 = vrot.lane.b32.xlu1 %v1350_v10, %s1143_s24 }
  0x58   : > { %499 = vrot.lane.b32.xlu2 %v432_v11, %s1143_s24 }
  0x5f   : > { %501 = vrot.lane.b32.xlu0 %v1359_v12, %s1143_s24  ;;  %503 = vrot.lane.b32.xlu1 %v1362_v13, %s1143_s24 }
  0x60   : > { %505 = vrot.lane.b32.xlu2 %v435_v14, %s1143_s24 }
  0x67   : > { %507 = vrot.lane.b32.xlu0 %v1371_v15, %s1143_s24 }
  0x9a   : > { %v454_v19 = vpop.permute.xlu2 %453 }
  0x9b   : > { %v465_v20 = vmul.f32 %v454_v19, %v1380_v18 }
  0x9d   : > { %v473_v21 = vadd.f32 %v465_v20, %v441_v17 }
  0x9f   : > { %481 = vst [vmem:[%s1384_s30 + $0x20] sm:$0xff] %v473_v21 }
  0xa2   : > { %v456_v25 = vpop.permute.xlu2 %455 }
  0xa3   : > { %v466_v26 = vmul.f32 %v456_v25, %v1392_v24 }
  0xa5   : > { %v474_v27 = vadd.f32 %v466_v26, %v442_v23 }
  0xa7   : > { %482 = vst [vmem:[%s1384_s30 + $0x28] sm:$0xff] %v474_v27 }
  0xaa   : > { %v494_v29 = vpop.permute.xlu2 %493 }
  0xab   : > { %v509_v30 = vmul.f32 %v494_v29, %v1380_v18 }
  0xad   : > { %v517_v31 = vadd.f32 %v509_v30, %v485_v28 }
  0xaf   : > { %525 = vst [vmem:[%s1401_s15] sm:$0xff] %v517_v31 }
  0xb1   : > { %v446_v34 = vpop.permute.xlu0 %445  ;;  %v450_v35 = vpop.permute.xlu1 %449 }
  0xb2   : > { %v461_v36 = vmul.f32 %v446_v34, %v1380_v18  ;;  %v463_v37 = vmul.f32 %v450_v35, %v1380_v18  ;;  %v500_v41 = vpop.permute.xlu2 %499 }
  0xb3   : > { %v512_v42 = vmul.f32 %v500_v41, %v1392_v24 }
  0xb4   : > { %v469_v39 = vadd.f32 %v461_v36, %v437_v32  ;;  %v471_v40 = vadd.f32 %v463_v37, %v439_v33 }
  0xb5   : > { %v520_v43 = vadd.f32 %v512_v42, %v488_v38 }
  0xb6   : > { %477 = vst [vmem:[%s1384_s30] sm:$0xff] %v469_v39 }
  0xb7   : > { %479 = vst [vmem:[%s1384_s30 + $0x10] sm:$0xff] %v471_v40 }
  0xb8   : > { %528 = vst [vmem:[%s1401_s15 + $0x18] sm:$0xff] %v520_v43 }
  0xb9   : > { %v448_v46 = vpop.permute.xlu0 %447  ;;  %v452_v47 = vpop.permute.xlu1 %451 }
  0xba   : > { %v462_v48 = vmul.f32 %v448_v46, %v1392_v24  ;;  %v464_v49 = vmul.f32 %v452_v47, %v1392_v24  ;;  %v506_v53 = vpop.permute.xlu2 %505 }
  0xbb   : > { %v515_v54 = vmul.f32 %v506_v53, %v1380_v18 }
  0xbc   : > { %v470_v51 = vadd.f32 %v462_v48, %v438_v44  ;;  %v472_v52 = vadd.f32 %v464_v49, %v440_v45 }
  0xbd   : > { %v523_v55 = vadd.f32 %v515_v54, %v491_v50 }
  0xbe   : > { %478 = vst [vmem:[%s1384_s30 + $0x8] sm:$0xff] %v470_v51 }
  0xbf   : > { %480 = vst [vmem:[%s1384_s30 + $0x18] sm:$0xff] %v472_v52 }
  0xc0   : > { %531 = vst [vmem:[%s1401_s15 + $0x30] sm:$0xff] %v523_v55 }
  0xc1   : > { %v458_v58 = vpop.permute.xlu0 %457  ;;  %v460_v59 = vpop.permute.xlu1 %459 }
  0xc2   : > { %v467_v60 = vmul.f32 %v458_v58, %v1380_v18  ;;  %v468_v61 = vmul.f32 %v460_v59, %v1392_v24 }
  0xc4   : > { %v475_v62 = vadd.f32 %v467_v60, %v443_v56  ;;  %v476_v63 = vadd.f32 %v468_v61, %v444_v57 }
  0xc6   : > { %483 = vst [vmem:[%s1384_s30 + $0x30] sm:$0xff] %v475_v62 }
  0xc7   : > { %484 = vst [vmem:[%s1384_s30 + $0x38] sm:$0xff] %v476_v63 }
  0xc8   : > { %1044 = shalt.err (!%p1041_p13)
}
  0xc9   : > { %s1144_s12 = smov 128   ;;  %s1145_s28 = smov 8   ;;  %v496_v2 = vpop.permute.xlu0 %495  ;;  %v498_v3 = vpop.permute.xlu1 %497  ;;  %v489_v8 = vmul.f32 %v1359_v12, %v1376_v16  ;;  %v490_v9 = vmul.f32 %v1362_v13, %v1388_v22  ;;  %v492_v12 = vmul.f32 %v1371_v15, %v1388_v22 }
  0xca   : > { %818 = dma.vmem_to_hbm [thread:$0]  (%p1231_p9), %s554_s7, 1024, %s556_s25, %s534_s13, %s1144_s12, %s1144_s12, %s1145_s28   ;;  %v510_v4 = vmul.f32 %v496_v2, %v1392_v24  ;;  %v511_v5 = vmul.f32 %v498_v3, %v1380_v18 }
  0xcb   : > { %s571_s24 = scalar_lea.hbm %s1517_s5, %s808_s16  ;;  %s572_s30 = sshll.u32 %s1401_s15, 4  ;;  %s573_s30 = int_to_ptr.vmem [resolvable:$true] %s572_s30 }
  0xcc   : > { %v518_v6 = vadd.f32 %v510_v4, %v486_v0  ;;  %v519_v7 = vadd.f32 %v511_v5, %v487_v1  ;;  %s574_s10 = sshll.u32 %s571_s24, 4  ;;  %s539_s1 = scalar_lea.sflag [#allocation12], %s1301_s8  ;;  %s575_s10 = int_to_ptr.hbm [resolvable:$true] %s574_s10 }
  0xcd   : > { %s1059_s21 = sshra.s32 %s575_s10, 4  ;;  %s1065_s25 = scalar_lea.hbm %s1517_s5, 128  ;;  %s1060_s21 = int_to_ptr.hbm [resolvable:$true] %s1059_s21 }
  0xce   : > { %526 = vst [vmem:[%s1401_s15 + $0x8] sm:$0xff] %v518_v6  ;;  %s1061_s20 = scalar_lea.hbm %s1060_s21, 64  ;;  %p1066_p3 = scmp.lt.s32.totalorder %s1060_s21, %s1517_s5 }
  0xcf   : > { %527 = vst [vmem:[%s1401_s15 + $0x10] sm:$0xff] %v519_v7  ;;  %p1062_p0 = scmp.ne.s32.totalorder %s1060_s21, %s1061_s20  ;;  %p1067_p4 = scmp.lt.s32.totalorder %s1065_s25, %s1061_s20 }
  0xd1   : > { %v502_v10 = vpop.permute.xlu0 %501  ;;  %v504_v11 = vpop.permute.xlu1 %503  ;;  %p1063_p1 = pnand %p1062_p0, %p1231_p9  ;;  %p1068_p5 = por %p1067_p4, %p1066_p3 }
  0xd2   : > { %v513_v14 = vmul.f32 %v502_v10, %v1380_v18  ;;  %v514_v17 = vmul.f32 %v504_v11, %v1392_v24 }
  0xd3   : > { %p1064_p2 = pneg %p1063_p1 }
  0xd4   : > { %v521_v19 = vadd.f32 %v513_v14, %v489_v8  ;;  %v522_v20 = vadd.f32 %v514_v17, %v490_v9 }
  0xd5   : > { %p1069_p6 = pnand %p1068_p5, %p1064_p2 }
  0xd6   : > { %529 = vst [vmem:[%s1401_s15 + $0x20] sm:$0xff] %v521_v19 }
  0xd7   : > { %530 = vst [vmem:[%s1401_s15 + $0x28] sm:$0xff] %v522_v20 }
  0xd9   : > { %v508_v13 = vpop.permute.xlu0 %507 }
  0xda   : > { %v516_v16 = vmul.f32 %v508_v13, %v1392_v24 }
  0xdc   : > { %v524_v18 = vadd.f32 %v516_v16, %v492_v12 }
  0xde   : > { %532 = vst [vmem:[%s1401_s15 + $0x38] sm:$0xff] %v524_v18 }
  0xdf   : > { %1072 = shalt.err (!%p1069_p6)
}
  0xe0   : > { %819 = dma.vmem_to_hbm [thread:$0]  (%p1231_p9), %s573_s30, 1024, %s575_s10, %s539_s1, %s1144_s12, %s1144_s12, %s1145_s28  }
  0xe1 PF: > { %s1539_s15 = sld [smem:[#allocation19_spill]]  ;;  %s589_s29 = sand.u32 1, %s1119_s18  }
  0xe2   : > { %p836_p7 = pnand %p776_p12, %p1238_p11  ;;  %s590_s17 = scalar_lea.sflag [#allocation4], %s589_s29 }
  0xe4   : > { %p837_p8 = pneg %p836_p7 }
  0xe6   : > { %1110 = dma.done.wait (%p837_p8), %s590_s17, 1024  }
  0xe7   : > { %1112 = vsyncadd (%p837_p8), %s590_s17, 4294966272  ;;  %s600_s27 = scalar_lea.sflag [#allocation12], %s589_s29 }
  0xe8   : > { %1114 = dma.done.wait (%p837_p8), %s600_s27, 1024  }
  0xe9   : > { %1116 = vsyncadd (%p837_p8), %s600_s27, 4294966272  ;;  %s31_s23 = sadd.s32 1, %s1539_s15   ;;  %s1540_s6 = sld [smem:[#allocation18_spill]] }
  0xea   : > { %p28_p10 = scmp.ge.s32.totalorder %s31_s23, 4   ;;  %s1541_s20 = sld [smem:[#allocation21_spill]] }
  0xeb   : > { %s1542_s0 = sld [smem:[#allocation20_spill]]  ;;  %s1543_s18 = smov %s1123_s19 }
  0xec   : > { %s1545_s21 = smov %s1135_s22 }
  0xed   :  { %30 = sbr.rel (!%p28_p10) target bundleno = 15 (0xf), region = 135 }
  0xef   : > { %s1544_s19 = smov %s1540_s6 }
  0xf1   : > { %s1546_s22 = smov %s1542_s0 }
  0xf2   :  { %606 = vsyncpa [#allocation3], 1 }
  0xf3   :  { %608 = vsyncpa [#allocation3 + $0x1], 1 }
  0xf4   :  { %609 = vsyncpa [#allocation6], 1 }
  0xf5   :  { %611 = vsyncpa [#allocation6 + $0x1], 1 }
  0xf6   :  { %612 = vsyncpa [#allocation9], 1 }
  0xf7   :  { %614 = vsyncpa [#allocation9 + $0x1], 1 }
  0xf8   :  { %615 = vsyncpa [#allocation4], 1 }
  0xf9   :  { %617 = vsyncpa [#allocation4 + $0x1], 1 }
  0xfa   :  { %618 = vsyncpa [#allocation12], 1 }
  0xfb   :  { %620 = vsyncpa [#allocation12 + $0x1], 1 }

</bundles_post_ra>
